<compile_context>
chip_gen: v6e
topology: v6e:2x2x1
jax: 0.10.0
libtpu: 0.0.40
codegen_flags: <defaults>
</compile_context>

<pallas_src>
import math
import functools

import jax
import jax.numpy as jnp
from jax import lax
from jax.experimental import pallas as pl
from jax.experimental.pallas import tpu as pltpu


def _round_up(v: int, m: int) -> int:
    return ((v + m - 1) // m) * m


def _projection_kernel(x_ref, w1_ref, w2_ref, o_ref):
    # x_ref:  (tm, d_in_p)       VMEM tile of flattened input rows
    # w1_ref: (d_in_p, d_out_p)  full weight, grid-invariant (single-buffered)
    # w2_ref: (d_out_p, d_out_p) full weight, grid-invariant (single-buffered)
    # o_ref:  (tm, d_out_p)      output tile
    h = jnp.dot(x_ref[...], w1_ref[...], preferred_element_type=jnp.float32)
    # exact (erf-based) GELU, matching torch.nn.functional.gelu default
    g = 0.5 * h * (1.0 + lax.erf(h * (1.0 / math.sqrt(2.0))))
    # cast GELU output to the weight dtype so the MXU sees matching operands
    # (a no-op for f32; one extra rounding step for bf16 weights).
    y = jnp.dot(g.astype(w2_ref.dtype), w2_ref[...],
                preferred_element_type=jnp.float32)
    o_ref[...] = y.astype(o_ref.dtype)


@functools.partial(jax.jit, static_argnames=("tm",))
def projection_forward(x, w1_t, w2_t, *, tm=256):
    """x: (..., d_in); w1_t: (d_in, d_out); w2_t: (d_out, d_out)."""
    d_in = x.shape[-1]
    d_out = w1_t.shape[-1]
    lead = x.shape[:-1]
    m = math.prod(lead) if lead else 1

    itemsize = jnp.dtype(x.dtype).itemsize
    # dtype-aware sublane multiple for the row (second-minor) axis
    row_mult = {4: 8, 2: 16, 1: 32}.get(itemsize, 8)

    # Lane-dense feature padding (multiples of 128) -> unmasked vector stores.
    d_in_p = _round_up(d_in, 128)
    d_out_p = _round_up(d_out, 128)

    # Row tiling: big tiles to feed the MXU, but keep >=2 grid programs when
    # there is enough work so both v7x TensorCores get a share.
    m_p = _round_up(max(m, 1), row_mult)
    tm_eff = min(_round_up(tm, row_mult), m_p)
    if tm_eff >= m_p and m_p >= 256:
        tm_eff = _round_up(pl.cdiv(m_p, 2), row_mult)
    grid_m = pl.cdiv(m_p, tm_eff)
    m_p = grid_m * tm_eff

    # Zero-pad inputs/weights (zeros are exact: gelu(0)=0, 0 @ W = 0).
    x2 = x.reshape(m, d_in)
    if (m_p, d_in_p) != (m, d_in):
        x2 = jnp.pad(x2, ((0, m_p - m), (0, d_in_p - d_in)))
    w1p = w1_t
    if (d_in_p, d_out_p) != (d_in, d_out):
        w1p = jnp.pad(w1_t, ((0, d_in_p - d_in), (0, d_out_p - d_out)))
    w2p = w2_t
    if d_out_p != d_out:
        w2p = jnp.pad(w2_t, ((0, d_out_p - d_out), (0, d_out_p - d_out)))

    # Advisory cost estimate for the XLA scheduler.
    flops = 2 * m_p * d_in_p * d_out_p + 2 * m_p * d_out_p * d_out_p
    cost = pl.CostEstimate(
        flops=flops,
        transcendentals=m_p * d_out_p,
        bytes_accessed=itemsize * (m_p * d_in_p + d_in_p * d_out_p
                                   + d_out_p * d_out_p + m_p * d_out_p),
    )

    # Explicit VMEM budget: single-buffered weights + double-buffered x/out
    # tiles + f32 intermediates, with headroom; clamped to stay inside v7x's
    # 64 MiB physical VMEM (and comfortably under v5e/v6e's 128 MiB).
    w_bytes = (d_in_p * d_out_p + d_out_p * d_out_p) * itemsize
    io_bytes = 2 * tm_eff * (d_in_p + d_out_p) * itemsize
    tmp_bytes = 4 * tm_eff * d_out_p * 4
    vmem_limit = int(min(max(1.5 * (w_bytes + io_bytes + tmp_bytes) + (4 << 20),
                             16 << 20),
                         64 << 20))

    out = pl.pallas_call(
        _projection_kernel,
        out_shape=jax.ShapeDtypeStruct((m_p, d_out_p), x.dtype),
        grid_spec=pltpu.PrefetchScalarGridSpec(
            num_scalar_prefetch=0,
            grid=(grid_m,),
            in_specs=[
                # streamed activations: default double-buffered pipeline
                pl.BlockSpec((tm_eff, d_in_p), lambda i: (i, 0)),
                # grid-invariant weights: single-buffered (half the VMEM)
                pl.BlockSpec((d_in_p, d_out_p), lambda i: (0, 0),
                             pipeline_mode=pl.Buffered(buffer_count=1)),
                pl.BlockSpec((d_out_p, d_out_p), lambda i: (0, 0),
                             pipeline_mode=pl.Buffered(buffer_count=1)),
            ],
            out_specs=pl.BlockSpec((tm_eff, d_out_p), lambda i: (i, 0)),
        ),
        compiler_params=pltpu.CompilerParams(
            dimension_semantics=("parallel",),
            vmem_limit_bytes=vmem_limit,
        ),
        cost_estimate=cost,
    )(x2, w1p, w2p)

    out = out[:m, :d_out]
    return out.reshape(*lead, d_out)


def xavier_uniform(key, fan_out, fan_in, dtype=jnp.float32):
    """Matches nn.init.xavier_uniform_ on an nn.Linear weight of shape (out, in)."""
    bound = math.sqrt(6.0 / (fan_in + fan_out))
    return jax.random.uniform(key, (fan_out, fan_in), dtype=dtype,
                              minval=-bound, maxval=bound)


if __name__ == "__main__":
    # Small shapes implied by the module: sequence of feature vectors.
    B, S, D_IN, D_OUT = 2, 8, 32, 32

    key = jax.random.PRNGKey(0)
    kx, k1, k2 = jax.random.split(key, 3)

    x = jax.random.normal(kx, (B, S, D_IN), dtype=jnp.float32)

    # PyTorch nn.Linear weights have shape (d_out, d_in); init deterministically.
    w1 = xavier_uniform(k1, D_OUT, D_IN)    # linear1.weight
    w2 = xavier_uniform(k2, D_OUT, D_OUT)   # linear2.weight

    # Pass transposed weights so the kernel does x @ W^T via row-major matmul.
    y = projection_forward(x, w1.T, w2.T)
    jax.block_until_ready(y)

    # Pure-JAX reference check (exact GELU).
    h_ref = x @ w1.T
    g_ref = 0.5 * h_ref * (1.0 + lax.erf(h_ref / math.sqrt(2.0)))
    y_ref = g_ref @ w2.T
    assert y.shape == (B, S, D_OUT)
    assert jnp.allclose(y, y_ref, atol=1e-5, rtol=1e-5)

    print("KERNEL_OK")
</pallas_src>

<mosaic_0001>
module attributes {stable_mosaic.version = 11 : i64} {
  func.func @_projection_kernel(%arg0: i32, %arg1: memref<16x128xf32, #tpu.memory_space<vmem>>, %arg2: memref<128x128xf32, #tpu.memory_space<vmem>>, %arg3: memref<128x128xf32, #tpu.memory_space<vmem>>, %arg4: memref<16x128xf32, #tpu.memory_space<vmem>>) attributes {dimension_semantics = [#tpu.dimension_semantics<parallel>], iteration_bounds = array<i64: 1>, scalar_prefetch = 0 : i64, scratch_operands = 0 : i64, tpu.core_type = #tpu.core_type<tc>, window_params = [{transform_indices = @transform_0, window_bounds = array<i64: 16, 128>}, {pipeline_mode = #tpu.pipeline_mode<synchronous>, transform_indices = @transform_1, window_bounds = array<i64: 128, 128>}, {pipeline_mode = #tpu.pipeline_mode<synchronous>, transform_indices = @transform_2, window_bounds = array<i64: 128, 128>}, {transform_indices = @transform_3, window_bounds = array<i64: 16, 128>}]} {
    %c0 = arith.constant 0 : index
    %c0_0 = arith.constant 0 : index
    %0 = vector.load %arg1[%c0, %c0_0] : memref<16x128xf32, #tpu.memory_space<vmem>>, vector<16x128xf32>
    %c0_1 = arith.constant 0 : index
    %c0_2 = arith.constant 0 : index
    %1 = vector.load %arg2[%c0_1, %c0_2] : memref<128x128xf32, #tpu.memory_space<vmem>>, vector<128x128xf32>
    %cst = arith.constant dense<0.000000e+00> : vector<16x128xf32>
    %2 = tpu.matmul %0, %1, %cst {dimension_numbers = #tpu.dot_dimension_numbers<[1], [0], [0], [1], [0, 0, 1, 1], [], []>} : vector<16x128xf32>, vector<128x128xf32>, vector<16x128xf32> -> vector<16x128xf32>
    %cst_3 = arith.constant 5.000000e-01 : f32
    %3 = vector.broadcast %cst_3 : f32 to vector<16x128xf32>
    %4 = arith.mulf %3, %2 : vector<16x128xf32>
    %cst_4 = arith.constant 0.707106769 : f32
    %5 = vector.broadcast %cst_4 : f32 to vector<16x128xf32>
    %6 = arith.mulf %2, %5 : vector<16x128xf32>
    %7 = math.erf %6 : vector<16x128xf32>
    %cst_5 = arith.constant 1.000000e+00 : f32
    %8 = vector.broadcast %cst_5 : f32 to vector<16x128xf32>
    %9 = arith.addf %8, %7 : vector<16x128xf32>
    %10 = arith.mulf %4, %9 : vector<16x128xf32>
    %c0_6 = arith.constant 0 : index
    %c0_7 = arith.constant 0 : index
    %11 = vector.load %arg3[%c0_6, %c0_7] : memref<128x128xf32, #tpu.memory_space<vmem>>, vector<128x128xf32>
    %cst_8 = arith.constant dense<0.000000e+00> : vector<16x128xf32>
    %12 = tpu.matmul %10, %11, %cst_8 {dimension_numbers = #tpu.dot_dimension_numbers<[1], [0], [0], [1], [0, 0, 1, 1], [], []>} : vector<16x128xf32>, vector<128x128xf32>, vector<16x128xf32> -> vector<16x128xf32>
    %c0_9 = arith.constant 0 : index
    %c0_10 = arith.constant 0 : index
    %13 = vector.load %arg4[%c0_9, %c0_10] : memref<16x128xf32, #tpu.memory_space<vmem>>, vector<16x128xf32>
    tpu.vector_store %arg4[%c0_9, %c0_10], %12 {strides = array<i32>} : memref<16x128xf32, #tpu.memory_space<vmem>>, vector<16x128xf32>,
    return
  }
  func.func @transform_0(%arg0: i32) -> (i32, i32) {
    %c0_i32 = arith.constant 0 : i32
    %c0_i32_0 = arith.constant 0 : i32
    return %arg0, %c0_i32 : i32, i32
  }
  func.func @transform_1(%arg0: i32) -> (i32, i32) {
    %c0_i32 = arith.constant 0 : i32
    %c0_i32_0 = arith.constant 0 : i32
    %c0_i32_1 = arith.constant 0 : i32
    return %c0_i32, %c0_i32_0 : i32, i32
  }
  func.func @transform_2(%arg0: i32) -> (i32, i32) {
    %c0_i32 = arith.constant 0 : i32
    %c0_i32_0 = arith.constant 0 : i32
    %c0_i32_1 = arith.constant 0 : i32
    return %c0_i32, %c0_i32_0 : i32, i32
  }
  func.func @transform_3(%arg0: i32) -> (i32, i32) {
    %c0_i32 = arith.constant 0 : i32
    %c0_i32_0 = arith.constant 0 : i32
    return %arg0, %c0_i32 : i32, i32
  }
}

</mosaic_0001>

<bundles_post_ra>
// kernel: projection_forward.1
= control target key start
LH: loop header
LB: loop body
LE: loop exit
PB: predicated region body
PF: predicated region fallthrough
CT: control target
= control target key end

     0   :  { %s452_s1 = inlined_call_operand.vmem [shape: f32[128,128], index: 1, kind: input, shape index: {}]   ;;  %s453_s0 = inlined_call_operand.vmem [shape: f32[16,128], index: 0, kind: input, shape index: {}]   ;;  %s454_s2 = inlined_call_operand.vmem [shape: f32[128,128], index: 2, kind: input, shape index: {}]   ;;  %s455_s3 = inlined_call_operand.vmem [shape: f32[16,128], index: 3, kind: output, shape index: {}]  }
   0x1   :  { %v31_v0 = vld [vmem:[%s452_s1 + $0x78] sm:$0xff]  ;;  %v30_v1 = vld [vmem:[%s452_s1 + $0x70] sm:$0xff]  ;;  %v29_v2 = vld [vmem:[%s452_s1 + $0x68] sm:$0xff] }
   0x2   :  { %250 = vmatprep.subr.mxu0 %v31_v0  ;;  %v28_v3 = vld [vmem:[%s452_s1 + $0x60] sm:$0xff]  ;;  %v27_v5 = vld [vmem:[%s452_s1 + $0x58] sm:$0xff]  ;;  %v131_v7 = vld [vmem:[%s454_s2 + $0x70] sm:$0xff] }
   0x3   :  { %251 = vmatpush3.msra.mxu0 %v31_v0  ;;  %v14_v4 = vld [vmem:[%s453_s0] sm:$0xff]  ;;  %v132_v6 = vld [vmem:[%s454_s2 + $0x78] sm:$0xff]  ;;  %v26_v8 = vld [vmem:[%s452_s1 + $0x50] sm:$0xff] }
   0x4   :  { %252 = vmatprep.subr.mxu0 %v30_v1  ;;  %282 = vmatprep.mubr.f32.mxu0 %v14_v4  ;;  %v130_v9 = vld [vmem:[%s454_s2 + $0x68] sm:$0xff]  ;;  %v129_v11 = vld [vmem:[%s454_s2 + $0x60] sm:$0xff]  ;;  %v23_v13 = vld [vmem:[%s452_s1 + $0x38] sm:$0xff] }
   0x5   :  { %253 = vmatpush3.msra.mxu0 %v30_v1  ;;  %285 = vmatprep.subr.mxu1 %v132_v6  ;;  %v25_v10 = vld [vmem:[%s452_s1 + $0x48] sm:$0xff]  ;;  %v24_v12 = vld [vmem:[%s452_s1 + $0x40] sm:$0xff]  ;;  %v22_v14 = vld [vmem:[%s452_s1 + $0x30] sm:$0xff] }
   0x6   :  { %254 = vmatprep.subr.mxu0 %v29_v2  ;;  %286 = vmatpush3.msra.mxu1 %v132_v6  ;;  %v21_v15 = vld [vmem:[%s452_s1 + $0x28] sm:$0xff]  ;;  %v20_v16 = vld [vmem:[%s452_s1 + $0x20] sm:$0xff]  ;;  %v19_v17 = vld [vmem:[%s452_s1 + $0x18] sm:$0xff] }
   0x7   :  { %255 = vmatpush3.msra.mxu0 %v29_v2  ;;  %287 = vmatprep.subr.mxu1 %v131_v7  ;;  %v18_v18 = vld [vmem:[%s452_s1 + $0x10] sm:$0xff]  ;;  %v17_v19 = vld [vmem:[%s452_s1 + $0x8] sm:$0xff]  ;;  %v16_v20 = vld [vmem:[%s452_s1] sm:$0xff] }
   0x8   :  { %256 = vmatprep.subr.mxu0 %v28_v3  ;;  %288 = vmatpush3.msra.mxu1 %v131_v7  ;;  %v15_v21 = vld [vmem:[%s453_s0 + $0x8] sm:$0xff]  ;;  %v128_v22 = vld [vmem:[%s454_s2 + $0x58] sm:$0xff]  ;;  %v127_v23 = vld [vmem:[%s454_s2 + $0x50] sm:$0xff] }
   0x9   :  { %257 = vmatpush3.msra.mxu0 %v28_v3  ;;  %289 = vmatprep.subr.mxu1 %v130_v9  ;;  %v126_v24 = vld [vmem:[%s454_s2 + $0x48] sm:$0xff]  ;;  %v125_v25 = vld [vmem:[%s454_s2 + $0x40] sm:$0xff]  ;;  %v124_v26 = vld [vmem:[%s454_s2 + $0x38] sm:$0xff] }
   0xa   :  { %258 = vmatprep.subr.mxu0 %v27_v5  ;;  %290 = vmatpush3.msra.mxu1 %v130_v9  ;;  %v123_v27 = vld [vmem:[%s454_s2 + $0x30] sm:$0xff]  ;;  %v122_v28 = vld [vmem:[%s454_s2 + $0x28] sm:$0xff]  ;;  %v121_v29 = vld [vmem:[%s454_s2 + $0x20] sm:$0xff] }
   0xb   :  { %259 = vmatpush3.msra.mxu0 %v27_v5  ;;  %291 = vmatprep.subr.mxu1 %v129_v11  ;;  %v120_v30 = vld [vmem:[%s454_s2 + $0x18] sm:$0xff]  ;;  %v119_v31 = vld [vmem:[%s454_s2 + $0x10] sm:$0xff]  ;;  %v118_v32 = vld [vmem:[%s454_s2 + $0x8] sm:$0xff] }
   0xc   :  { %260 = vmatprep.subr.mxu0 %v26_v8  ;;  %292 = vmatpush3.msra.mxu1 %v129_v11  ;;  %v117_v33 = vld [vmem:[%s454_s2] sm:$0xff] }
   0xd   :  { %261 = vmatpush3.msra.mxu0 %v26_v8  ;;  %293 = vmatprep.subr.mxu1 %v128_v22 }
   0xe   :  { %262 = vmatprep.subr.mxu0 %v25_v10  ;;  %294 = vmatpush3.msra.mxu1 %v128_v22 }
   0xf   :  { %263 = vmatpush3.msra.mxu0 %v25_v10  ;;  %295 = vmatprep.subr.mxu1 %v127_v23 }
  0x10   :  { %264 = vmatprep.subr.mxu0 %v24_v12  ;;  %296 = vmatpush3.msra.mxu1 %v127_v23 }
  0x11   :  { %265 = vmatpush3.msra.mxu0 %v24_v12  ;;  %297 = vmatprep.subr.mxu1 %v126_v24 }
  0x12   :  { %266 = vmatprep.subr.mxu0 %v23_v13  ;;  %298 = vmatpush3.msra.mxu1 %v126_v24 }
  0x13   :  { %267 = vmatpush3.msra.mxu0 %v23_v13  ;;  %299 = vmatprep.subr.mxu1 %v125_v25 }
  0x14   :  { %268 = vmatprep.subr.mxu0 %v22_v14  ;;  %300 = vmatpush3.msra.mxu1 %v125_v25 }
  0x15   :  { %269 = vmatpush3.msra.mxu0 %v22_v14  ;;  %301 = vmatprep.subr.mxu1 %v124_v26 }
  0x16   :  { %270 = vmatprep.subr.mxu0 %v21_v15  ;;  %302 = vmatpush3.msra.mxu1 %v124_v26 }
  0x17   :  { %271 = vmatpush3.msra.mxu0 %v21_v15  ;;  %303 = vmatprep.subr.mxu1 %v123_v27 }
  0x18   :  { %272 = vmatprep.subr.mxu0 %v20_v16  ;;  %304 = vmatpush3.msra.mxu1 %v123_v27 }
  0x19   :  { %273 = vmatpush3.msra.mxu0 %v20_v16  ;;  %305 = vmatprep.subr.mxu1 %v122_v28 }
  0x1a   :  { %274 = vmatprep.subr.mxu0 %v19_v17  ;;  %306 = vmatpush3.msra.mxu1 %v122_v28 }
  0x1b   :  { %275 = vmatpush3.msra.mxu0 %v19_v17  ;;  %307 = vmatprep.subr.mxu1 %v121_v29 }
  0x1c   :  { %276 = vmatprep.subr.mxu0 %v18_v18  ;;  %308 = vmatpush3.msra.mxu1 %v121_v29 }
  0x1d   :  { %277 = vmatpush3.msra.mxu0 %v18_v18  ;;  %309 = vmatprep.subr.mxu1 %v120_v30 }
  0x1e   :  { %278 = vmatprep.subr.mxu0 %v17_v19  ;;  %310 = vmatpush3.msra.mxu1 %v120_v30 }
  0x1f   :  { %279 = vmatpush3.msra.mxu0 %v17_v19  ;;  %311 = vmatprep.subr.mxu1 %v119_v31 }
  0x20   :  { %280 = vmatprep.subr.mxu0 %v16_v20  ;;  %312 = vmatpush3.msra.mxu1 %v119_v31 }
  0x21   :  { %281 = vmatpush3.msra.mxu0 %v16_v20  ;;  %313 = vmatprep.subr.mxu1 %v118_v32 }
  0x22   :  { %283 = vmatmul.mubr.f32.vlgmr.msra.gmra.mxu0 %v15_v21  ;;  %314 = vmatpush3.msra.mxu1 %v118_v32 }
  0x23   :  { %315 = vmatprep.subr.mxu1 %v117_v33 }
  0x24   :  { %316 = vmatpush3.msra.mxu1 %v117_v33 }
  0xe2   :  { %v284_v34 = vpop.f32.mrf.mxu0 }
  0xe3   :  { %v110_v35 = vmul.f32 0.70710677, %v284_v34  ;;  %v108_v43 = vmul.f32 0.5, %v284_v34 }
  0xe4   :  { %v98_v36 = vpop.f32.mrf.mxu0 }
  0xe5   :  { %320 = verf.f32 %v110_v35  ;;  %v109_v37 = vmul.f32 0.70710677, %v98_v36  ;;  %v107_v41 = vmul.f32 0.5, %v98_v36 }
  0xe7   :  { %322 = verf.f32 %v109_v37 }
  0xf2   :  { %v321_v38 = vpop.eup %320 }
  0xf3   :  { %v114_v40 = vadd.f32 1.0, %v321_v38 }
  0xf4   :  { %v323_v39 = vpop.eup %322 }
  0xf5   :  { %v113_v42 = vadd.f32 1.0, %v323_v39  ;;  %v116_v45 = vmul.f32 %v114_v40, %v108_v43 }
  0xf7   :  { %v115_v44 = vmul.f32 %v113_v42, %v107_v41 }
  0xf9   :  { %317 = vmatprep.mubr.f32.mxu1 %v115_v44 }
  0xfa   :  { %318 = vmatmul.mubr.f32.vlgmr.msra.gmra.mxu1 %v116_v45 }
 0x1ba   :  { %v319_v46 = vpop.f32.mrf.mxu1 }
 0x1bb   :  { %209 = vst [vmem:[%s455_s3 + $0x8] sm:$0xff] %v319_v46 }
 0x1bc   :  { %v199_v47 = vpop.f32.mrf.mxu1 }
 0x1bd   :  { %208 = vst [vmem:[%s455_s3] sm:$0xff] %v199_v47 }

</bundles_post_ra>
